<compile_context>
chip_gen: v7x
topology: tpu7x:2x2x1
jax: 0.10.0
libtpu: 0.0.40
codegen_flags: <defaults>
</compile_context>

<pallas_src>
import functools

import jax
import jax.numpy as jnp
from jax.experimental import pallas as pl
from jax.experimental.pallas import tpu as pltpu

# NETWORK_SHAPE is not defined in the source file; choose a small, representative MLP:
#   input Linear (4 -> 32), one hidden Linear (32 -> 32), output Linear (32 -> 2)
NETWORK_SHAPE = [(4, 32), (32, 32), (32, 2)]

SUBLANE = 8          # f32 sublane multiple for the batch (second-to-last) dim
DEFAULT_TM = 1024    # max batch-tile rows per grid step


def _round_up(n, m):
    return ((n + m - 1) // m) * m


def _next_pow2(n):
    return 1 << (max(int(n), 1) - 1).bit_length()


# -----------------------------------------------------------------------------
# Kernel: whole MLP forward fused, one batch tile per grid step.
# refs = (x_ref, w0_ref, b0_ref, w1_ref, b1_ref, ..., o_ref)
# -----------------------------------------------------------------------------
def _make_kernel(n_layers):
    def kernel(*refs):
        x_ref = refs[0]
        o_ref = refs[-1]
        wb = refs[1:-1]
        h = x_ref[...]                                   # (tm, in_dim) f32
        for layer in range(n_layers):
            w_ref = wb[2 * layer]
            b_ref = wb[2 * layer + 1]
            h = jnp.dot(h, w_ref[...], preferred_element_type=jnp.float32) + b_ref[...]
            if layer < n_layers - 1:
                h = jnp.maximum(h, 0.0)                  # ReLU on all but the output layer
        o_ref[...] = h.astype(o_ref.dtype)               # (tm, out_dim)
    return kernel


# -----------------------------------------------------------------------------
# One-time parameter preparation (hoisted out of the forward path).
# params: list of (W, b) with W of shape (out_features, in_features)  (nn.Linear layout)
# Returns a flat tuple (w0, b0, w1, b1, ...) with W as (in, out) and b as (1, out), all f32.
# -----------------------------------------------------------------------------
def prepare_params(params):
    flat = []
    for (w, b) in params:
        flat.append(jnp.asarray(w, jnp.float32).T)           # (in_features, out_features)
        flat.append(jnp.asarray(b, jnp.float32).reshape(1, -1))
    return tuple(flat)


# -----------------------------------------------------------------------------
# Gridded pallas_call over the batch dim.
# -----------------------------------------------------------------------------
@functools.partial(jax.jit, static_argnames=("tm",))
def _forward_tiled(x_p, params_flat, *, tm):
    bp, in_dim = x_p.shape
    n_layers = len(params_flat) // 2
    out_dim = params_flat[-2].shape[1]

    in_specs = [pl.BlockSpec((tm, in_dim), lambda i: (i, 0))]          # x tile (pipelined)
    for layer in range(n_layers):
        w = params_flat[2 * layer]
        b = params_flat[2 * layer + 1]
        in_specs.append(pl.BlockSpec(w.shape, lambda i: (0, 0)))       # resident weight
        in_specs.append(pl.BlockSpec(b.shape, lambda i: (0, 0)))       # resident bias

    return pl.pallas_call(
        _make_kernel(n_layers),
        out_shape=jax.ShapeDtypeStruct((bp, out_dim), jnp.float32),    # narrow output
        grid=(bp // tm,),
        in_specs=in_specs,
        out_specs=pl.BlockSpec((tm, out_dim), lambda i: (i, 0)),
        compiler_params=pltpu.CompilerParams(
            dimension_semantics=("parallel",),   # megacore sharding on v7x; no-op on v5e/v6e
            vmem_limit_bytes=32 * 1024 * 1024,   # tiny footprint; safe on v7x's 64 MiB VMEM
        ),
    )(x_p, *params_flat)


# -----------------------------------------------------------------------------
# Batch-tile selection: bucket batch sizes to bound recompiles, keep >=2 grid
# steps when possible so both v7x TensorCores are used.
# -----------------------------------------------------------------------------
def _choose_tiling(batch, tm_max=DEFAULT_TM):
    b8 = _round_up(max(int(batch), 1), SUBLANE)
    if b8 >= 2 * tm_max:
        bp = _round_up(b8, tm_max)                 # bucket to multiples of the max tile
        tm = tm_max
    else:
        bp = max(SUBLANE, _next_pow2(b8))          # power-of-two buckets
        tm = bp // 2 if bp >= 2 * SUBLANE else bp  # >=2 grid steps -> v7x megacore
    return bp, tm


def qnetwork_forward(x, prepped, *, tm=DEFAULT_TM):
    """x: (batch, in_features) float32. prepped: output of prepare_params()."""
    batch = x.shape[0]
    bp, tm_eff = _choose_tiling(batch, tm_max=tm)
    # Only the batch (sublane) dim is padded; feature dims stay at their real widths.
    x_p = jnp.pad(x.astype(jnp.float32), ((0, bp - batch), (0, 0)))
    out_p = _forward_tiled(x_p, prepped, tm=tm_eff)
    return out_p[:batch]                           # trim padded rows; columns already narrow


# -----------------------------------------------------------------------------
# Init + pure-JAX reference
# -----------------------------------------------------------------------------
def init_params(key):
    """Deterministic init matching nn.Linear shapes: W is (out_features, in_features)."""
    params = []
    for (fan_in, fan_out) in NETWORK_SHAPE:
        key, kw, kb = jax.random.split(key, 3)
        bound = 1.0 / jnp.sqrt(jnp.float32(fan_in))
        w = jax.random.uniform(kw, (fan_out, fan_in), jnp.float32, -bound, bound)
        b = jax.random.uniform(kb, (fan_out,), jnp.float32, -bound, bound)
        params.append((w, b))
    return params


def reference_forward(x, params):
    h = x
    for i, (w, b) in enumerate(params):
        h = h @ w.T + b
        if i < len(params) - 1:
            h = jnp.maximum(h, 0.0)
    return h


if __name__ == "__main__":
    key = jax.random.PRNGKey(0)
    k_x, k_x2, k_p = jax.random.split(key, 3)

    in_dim = NETWORK_SHAPE[0][0]
    out_dim = NETWORK_SHAPE[-1][1]
    params = init_params(k_p)
    prepped = prepare_params(params)

    # --- small batch (matches the original module's typical usage) ---
    batch = 2
    x = jax.random.normal(k_x, (batch, in_dim), jnp.float32)
    out = jax.block_until_ready(qnetwork_forward(x, prepped))
    ref = reference_forward(x, params)
    assert out.shape == (batch, out_dim), out.shape
    assert jnp.allclose(out, ref, atol=1e-5, rtol=1e-5), "small-batch mismatch vs reference"

    # --- larger batch exercising the multi-step grid (bp=512, tm=256, grid=2) ---
    batch2 = 300
    x2 = jax.random.normal(k_x2, (batch2, in_dim), jnp.float32)
    out2 = jax.block_until_ready(qnetwork_forward(x2, prepped))
    ref2 = reference_forward(x2, params)
    assert out2.shape == (batch2, out_dim), out2.shape
    assert jnp.allclose(out2, ref2, atol=1e-5, rtol=1e-5), "large-batch mismatch vs reference"

    print("KERNEL_OK")
</pallas_src>

<mosaic_0001>
module attributes {stable_mosaic.version = 11 : i64} {
  func.func @kernel(%arg0: i32, %arg1: memref<8x4xf32, #tpu.memory_space<vmem>>, %arg2: memref<4x32xf32, #tpu.memory_space<vmem>>, %arg3: memref<1x32xf32, #tpu.memory_space<vmem>>, %arg4: memref<32x32xf32, #tpu.memory_space<vmem>>, %arg5: memref<1x32xf32, #tpu.memory_space<vmem>>, %arg6: memref<32x2xf32, #tpu.memory_space<vmem>>, %arg7: memref<1x2xf32, #tpu.memory_space<vmem>>, %arg8: memref<8x2xf32, #tpu.memory_space<vmem>>) attributes {dimension_semantics = [#tpu.dimension_semantics<parallel>], iteration_bounds = array<i64: 1>, scalar_prefetch = 0 : i64, scratch_operands = 0 : i64, tpu.core_type = #tpu.core_type<tc>, window_params = [{transform_indices = @transform_0, window_bounds = array<i64: 8, 4>}, {pipeline_mode = #tpu.pipeline_mode<synchronous>, transform_indices = @transform_1, window_bounds = array<i64: 4, 32>}, {pipeline_mode = #tpu.pipeline_mode<synchronous>, transform_indices = @transform_2, window_bounds = array<i64: 1, 32>}, {pipeline_mode = #tpu.pipeline_mode<synchronous>, transform_indices = @transform_3, window_bounds = array<i64: 32, 32>}, {pipeline_mode = #tpu.pipeline_mode<synchronous>, transform_indices = @transform_4, window_bounds = array<i64: 1, 32>}, {pipeline_mode = #tpu.pipeline_mode<synchronous>, transform_indices = @transform_5, window_bounds = array<i64: 32, 2>}, {pipeline_mode = #tpu.pipeline_mode<synchronous>, transform_indices = @transform_6, window_bounds = array<i64: 1, 2>}, {transform_indices = @transform_7, window_bounds = array<i64: 8, 2>}]} {
    %c0 = arith.constant 0 : index
    %c0_0 = arith.constant 0 : index
    %0 = vector.load %arg1[%c0, %c0_0] : memref<8x4xf32, #tpu.memory_space<vmem>>, vector<8x4xf32>
    %c0_1 = arith.constant 0 : index
    %c0_2 = arith.constant 0 : index
    %1 = vector.load %arg2[%c0_1, %c0_2] : memref<4x32xf32, #tpu.memory_space<vmem>>, vector<4x32xf32>
    %cst = arith.constant dense<0.000000e+00> : vector<8x32xf32>
    %2 = tpu.matmul %0, %1, %cst {dimension_numbers = #tpu.dot_dimension_numbers<[1], [0], [0], [1], [0, 0, 1, 1], [], []>} : vector<8x4xf32>, vector<4x32xf32>, vector<8x32xf32> -> vector<8x32xf32>
    %c0_3 = arith.constant 0 : index
    %c0_4 = arith.constant 0 : index
    %3 = vector.load %arg3[%c0_3, %c0_4] : memref<1x32xf32, #tpu.memory_space<vmem>>, vector<1x32xf32>
    %4 = vector.broadcast %3 : vector<1x32xf32> to vector<8x32xf32>
    %5 = arith.addf %2, %4 : vector<8x32xf32>
    %cst_5 = arith.constant 0.000000e+00 : f32
    %6 = vector.broadcast %cst_5 : f32 to vector<8x32xf32>
    %7 = arith.maximumf %5, %6 : vector<8x32xf32>
    %c0_6 = arith.constant 0 : index
    %c0_7 = arith.constant 0 : index
    %8 = vector.load %arg4[%c0_6, %c0_7] : memref<32x32xf32, #tpu.memory_space<vmem>>, vector<32x32xf32>
    %cst_8 = arith.constant dense<0.000000e+00> : vector<8x32xf32>
    %9 = tpu.matmul %7, %8, %cst_8 {dimension_numbers = #tpu.dot_dimension_numbers<[1], [0], [0], [1], [0, 0, 1, 1], [], []>} : vector<8x32xf32>, vector<32x32xf32>, vector<8x32xf32> -> vector<8x32xf32>
    %c0_9 = arith.constant 0 : index
    %c0_10 = arith.constant 0 : index
    %10 = vector.load %arg5[%c0_9, %c0_10] : memref<1x32xf32, #tpu.memory_space<vmem>>, vector<1x32xf32>
    %11 = vector.broadcast %10 : vector<1x32xf32> to vector<8x32xf32>
    %12 = arith.addf %9, %11 : vector<8x32xf32>
    %cst_11 = arith.constant 0.000000e+00 : f32
    %13 = vector.broadcast %cst_11 : f32 to vector<8x32xf32>
    %14 = arith.maximumf %12, %13 : vector<8x32xf32>
    %c0_12 = arith.constant 0 : index
    %c0_13 = arith.constant 0 : index
    %15 = vector.load %arg6[%c0_12, %c0_13] : memref<32x2xf32, #tpu.memory_space<vmem>>, vector<32x2xf32>
    %cst_14 = arith.constant dense<0.000000e+00> : vector<8x2xf32>
    %16 = tpu.matmul %14, %15, %cst_14 {dimension_numbers = #tpu.dot_dimension_numbers<[1], [0], [0], [1], [0, 0, 1, 1], [], []>} : vector<8x32xf32>, vector<32x2xf32>, vector<8x2xf32> -> vector<8x2xf32>
    %c0_15 = arith.constant 0 : index
    %c0_16 = arith.constant 0 : index
    %17 = vector.load %arg7[%c0_15, %c0_16] : memref<1x2xf32, #tpu.memory_space<vmem>>, vector<1x2xf32>
    %18 = vector.broadcast %17 : vector<1x2xf32> to vector<8x2xf32>
    %19 = arith.addf %16, %18 : vector<8x2xf32>
    %c0_17 = arith.constant 0 : index
    %c0_18 = arith.constant 0 : index
    %20 = vector.load %arg8[%c0_17, %c0_18] : memref<8x2xf32, #tpu.memory_space<vmem>>, vector<8x2xf32>
    tpu.vector_store %arg8[%c0_17, %c0_18], %19 {strides = array<i32>} : memref<8x2xf32, #tpu.memory_space<vmem>>, vector<8x2xf32>,
    return
  }
  func.func @transform_0(%arg0: i32) -> (i32, i32) {
    %c0_i32 = arith.constant 0 : i32
    %c0_i32_0 = arith.constant 0 : i32
    return %arg0, %c0_i32 : i32, i32
  }
  func.func @transform_1(%arg0: i32) -> (i32, i32) {
    %c0_i32 = arith.constant 0 : i32
    %c0_i32_0 = arith.constant 0 : i32
    %c0_i32_1 = arith.constant 0 : i32
    return %c0_i32, %c0_i32_0 : i32, i32
  }
  func.func @transform_2(%arg0: i32) -> (i32, i32) {
    %c0_i32 = arith.constant 0 : i32
    %c0_i32_0 = arith.constant 0 : i32
    %c0_i32_1 = arith.constant 0 : i32
    return %c0_i32, %c0_i32_0 : i32, i32
  }
  func.func @transform_3(%arg0: i32) -> (i32, i32) {
    %c0_i32 = arith.constant 0 : i32
    %c0_i32_0 = arith.constant 0 : i32
    %c0_i32_1 = arith.constant 0 : i32
    return %c0_i32, %c0_i32_0 : i32, i32
  }
  func.func @transform_4(%arg0: i32) -> (i32, i32) {
    %c0_i32 = arith.constant 0 : i32
    %c0_i32_0 = arith.constant 0 : i32
    %c0_i32_1 = arith.constant 0 : i32
    return %c0_i32, %c0_i32_0 : i32, i32
  }
  func.func @transform_5(%arg0: i32) -> (i32, i32) {
    %c0_i32 = arith.constant 0 : i32
    %c0_i32_0 = arith.constant 0 : i32
    %c0_i32_1 = arith.constant 0 : i32
    return %c0_i32, %c0_i32_0 : i32, i32
  }
  func.func @transform_6(%arg0: i32) -> (i32, i32) {
    %c0_i32 = arith.constant 0 : i32
    %c0_i32_0 = arith.constant 0 : i32
    %c0_i32_1 = arith.constant 0 : i32
    return %c0_i32, %c0_i32_0 : i32, i32
  }
  func.func @transform_7(%arg0: i32) -> (i32, i32) {
    %c0_i32 = arith.constant 0 : i32
    %c0_i32_0 = arith.constant 0 : i32
    return %arg0, %c0_i32 : i32, i32
  }
}

</mosaic_0001>

<bundles_post_ra>
// kernel: _forward_tiled.1
= control target key start
LH: loop header
LB: loop body
LE: loop exit
PB: predicated region body
PF: predicated region fallthrough
CT: control target
= control target key end

     0   :  { %vm39_vm0 = vcmask 1043456   ;;  %vm35_vm1 = vcmask 31744   ;;  %v351_v0 = vmov 0.0   ;;  %vm352_vm2 = vmmov 0   ;;  %s436_s1 = inlined_call_operand.vmem [shape: f32[4,32], index: 1, kind: input, shape index: {}]   ;;  %s437_s0 = inlined_call_operand.vmem [shape: f32[8,4], index: 0, kind: input, shape index: {}]   ;;  %s438_s3 = inlined_call_operand.vmem [shape: f32[32,32], index: 3, kind: input, shape index: {}]   ;;  %s439_s5 = inlined_call_operand.vmem [shape: f32[32,2], index: 5, kind: input, shape index: {}]   ;;  %s440_s2 = inlined_call_operand.vmem [shape: f32[1,32], index: 2, kind: input, shape index: {}]   ;;  %s441_s4 = inlined_call_operand.vmem [shape: f32[1,32], index: 4, kind: input, shape index: {}]   ;;  %s442_s6 = inlined_call_operand.vmem [shape: f32[1,2], index: 6, kind: input, shape index: {}]   ;;  %s443_s7 = inlined_call_operand.vmem [shape: f32[8,2], index: 7, kind: output, shape index: {}]  }
   0x1   :  { %309 = vmatprep.subr.mxu0 %v351_v0  ;;  %v27_v1 = vld [vmem:[%s436_s1] sm:$0xf]  ;;  %311 = vmatprep.mubr.msk.f32.mxu0 %vm352_vm2, %v351_v0  ;;  %v353_v4 = vmov 0.0|0.0   ;;  %v115_v5 = vld [vmem:[%s438_s3 + $0x8] sm:$0xff]  ;;  %v116_v7 = vld [vmem:[%s438_s3 + $0x10] sm:$0xff]  ;;  %vm125_vm3 = vcmask 261120  }
   0x2   :  { %v26_v2 = vld [vmem:[%s437_s0] sm:$0xff]  ;;  %310 = vmatpush3.msk.msra.mxu0 %vm39_vm0, %v27_v1  ;;  %336 = vmatprep.subr.bf16.mxu1 %v353_v4  ;;  %v117_v8 = vld [vmem:[%s438_s3 + $0x18] sm:$0xff]  ;;  %v201_v11 = vld [vmem:[%s439_s5 + $0x8] sm:$0xff]  ;;  %vm284_vm4 = vcmask 15360  }
   0x3   :  { %v114_v3 = vld [vmem:[%s438_s3] sm:$0xff]  ;;  %312 = vmatmul.mubr.msk.f32.vlgmr.msra.gmra.mrb[0].mxu0 %vm35_vm1, %v26_v2  ;;  %322 = vmatprep.mubr.msk.f32.mxu1 %vm352_vm2, %v351_v0  ;;  %v340_v9 = vpack.c.bf16 %v117_v8, %v116_v7  ;;  %v202_v18 = vld [vmem:[%s439_s5 + $0x10] sm:$0xff]  ;;  %v203_v19 = vld [vmem:[%s439_s5 + $0x18] sm:$0xff] }
   0x4   :  { %v337_v6 = vpack.c.bf16 %v115_v5, %v114_v3  ;;  %342 = vmatprep.subr.bf16.mxu0 %v353_v4  ;;  %333 = vmatprep.mubr.msk.f32.mxu0 %vm352_vm2, %v351_v0  ;;  %v200_v10 = vld [vmem:[%s439_s5] sm:$0xff]  ;;  %v346_v20 = vpack.c.bf16 %v203_v19, %v202_v18 }
   0x5   :  { %v343_v12 = vpack.c.bf16 %v201_v11, %v200_v10  ;;  %v290_v13 = vld [vmem:[%s440_s2] ss:$0 sm:$0xff] }
   0x6   :  { %338 = vmatpush3.bf16.msra.mxu1 %v337_v6  ;;  %v293_v21 = vld [vmem:[%s441_s4] ss:$0 sm:$0xff] }
   0x7   :  { %339 = vmatprep.subr.bf16.mxu1 %v353_v4  ;;  %344 = vmatpush3.bf16.msra.mxu0 %v343_v12  ;;  %v295_v26 = vld [vmem:[%s442_s6] ss:$0 sm:$0xff] }
   0x8   :  { %345 = vmatprep.subr.bf16.mxu0 %v353_v4 }
   0xa   :  { %341 = vmatpush3.bf16.msra.mxu1 %v340_v9 }
   0xb   :  { %347 = vmatpush3.bf16.msra.mxu0 %v346_v20 }
  0xd6   :  { %v109_v14 = vpop.f32.mrb[0].mxu0 }
  0xd7   :  { %v110_v15 = vadd.f32 %v290_v13, %v109_v14  ;;  %v313_v16 = vpop.f32.mrb[1].mxu0 }
  0xd9   :  { %v113_v17 = vmax.f32 %v110_v15, 0.0 }
  0xdb   :  { %323 = vmatmul.mubr.msk.f32.vlgmr.msra.gmra.mrb[0].mxu1 %vm125_vm3, %v113_v17 }
 0x1ae   :  { %v195_v22 = vpop.f32.mrb[0].mxu1 }
 0x1af   :  { %v196_v23 = vadd.f32 %v293_v21, %v195_v22  ;;  %v324_v24 = vpop.f32.mrb[1].mxu1 }
 0x1b1   :  { %v199_v25 = vmax.f32 %v196_v23, 0.0 }
 0x1b3   :  { %334 = vmatmul.mubr.msk.f32.vlgmr.msra.gmra.mrb[2].mxu0 %vm125_vm3, %v199_v25 }
 0x286   :  { %v280_v27 = vpop.f32.mrb[2].mxu0 }
 0x287   :  { %v281_v28 = vadd.f32 %v295_v26, %v280_v27  ;;  %v335_v29 = vpop.f32.mrb[3].mxu0 }
 0x289   :  { %285 = vst.msk [vmem:[%s443_s7] sm:$0xff] %vm284_vm4, %v281_v28 }

</bundles_post_ra>
